<compile_context>
chip_gen: v5e
topology: v5e:2x2
jax: 0.10.0
libtpu: 0.0.40
codegen_flags: <defaults>
</compile_context>

<pallas_src>
import functools

import jax
import jax.numpy as jnp
from jax.experimental import pallas as pl
from jax.experimental.pallas import tpu as pltpu


def _round_up(x, k):
    return ((x + k - 1) // k) * k


def nnlm_kernel(idx_ref, m_ref, d_ref, u_ref, b_ref, o_ref, *,
                n_step, n_class_p, n_hidden_p):
    tb = o_ref.shape[0]
    idx = idx_ref[...]                                             # [TB, n_step] int32
    lane = jax.lax.broadcasted_iota(jnp.int32, (tb, n_class_p), 1)

    # Combined one-hot for all n_step positions: [TB, n_step*n_class_p] bf16.
    # Each piece is an exact multiple of the 128-lane vreg width, so the concat
    # is a lane-aligned placement (no relayout); one cast per piece, same total
    # element count as a single fused compare.
    onehot = jnp.concatenate(
        [(idx[:, s:s + 1] == lane).astype(jnp.bfloat16) for s in range(n_step)],
        axis=1)

    # Single fused MXU pass: embedding gather + x @ [Wt | Ht], f32 accumulation.
    xproj = jnp.dot(onehot, m_ref[...],
                    preferred_element_type=jnp.float32)            # [TB, ncols] f32

    xw = xproj[:, :n_class_p]                                      # x @ W^T (lane-aligned)
    xh = xproj[:, n_class_p:]                                      # x @ H^T (lane-dense)
    h = jnp.tanh(d_ref[...] + xh)                                  # [TB, n_hidden_p] f32
    o_ref[...] = (b_ref[...] + xw
                  + jnp.dot(h.astype(jnp.bfloat16), u_ref[...],
                            preferred_element_type=jnp.float32))   # [TB, n_class_p] f32


def nnlm_forward(x_idx, C, Ht, d, Ut, Wt, b):
    """NNLM forward. x_idx: [B, n_step] int32; Ht/Ut/Wt are the .weight.T layouts."""
    B, n_step = x_idx.shape
    n_class, m = C.shape
    n_hidden = Ht.shape[1]

    # Pad class / hidden dims to multiples of 128 (lane-dense tiles, full MXU
    # columns, unmasked stores).  Zero padding is numerically exact.
    n_class_p = _round_up(n_class, 128)
    n_hidden_p = _round_up(n_hidden, 128)
    ncols = n_class_p + n_hidden_p
    K = n_step * n_class_p

    C_p = jnp.pad(C.astype(jnp.float32), ((0, n_class_p - n_class), (0, 0)))
    Wt_p = jnp.pad(Wt.astype(jnp.float32), ((0, 0), (0, n_class_p - n_class)))
    Ht_p = jnp.pad(Ht.astype(jnp.float32), ((0, 0), (0, n_hidden_p - n_hidden)))
    Ut_p = jnp.pad(Ut.astype(jnp.float32),
                   ((0, n_hidden_p - n_hidden), (0, n_class_p - n_class)))
    d_p = jnp.pad(d.astype(jnp.float32), (0, n_hidden_p - n_hidden)).reshape(1, n_hidden_p)
    b_p = jnp.pad(b.astype(jnp.float32), (0, n_class_p - n_class)).reshape(1, n_class_p)

    # Batch-independent precompute (f32, then ONE cast to bf16):
    #   M[s*n_class_p + c, :] = C[c] @ [Wt_s | Ht_s]
    w_cat = jnp.concatenate([Wt_p, Ht_p], axis=1)                  # [n_step*m, ncols] f32
    M = jnp.einsum('cm,smn->scn', C_p, w_cat.reshape(n_step, m, ncols))
    M = M.reshape(K, ncols).astype(jnp.bfloat16)                   # [K, ncols] bf16
    u_bf = Ut_p.astype(jnp.bfloat16)

    # Batch tiling: single block for tiny B; otherwise >= 2 grid steps so the
    # "parallel" axis shards across v7x's two TensorCores, rows multiple of 8,
    # capped at 512 (fills v5e/v6e MXU rows, amortizes per-step overhead).
    if B <= 16:
        TB = B
    else:
        TB = min(512, min(B, _round_up(pl.cdiv(B, 2), 8)))
    nb = pl.cdiv(B, TB)

    kernel = functools.partial(nnlm_kernel, n_step=n_step,
                               n_class_p=n_class_p, n_hidden_p=n_hidden_p)

    flops = 2 * B * K * ncols + 2 * B * n_hidden_p * n_class_p
    bytes_accessed = (x_idx.size * 4 + M.size * 2 + u_bf.size * 2
                      + d_p.size * 4 + b_p.size * 4 + B * n_class_p * 4)

    out = pl.pallas_call(
        kernel,
        out_shape=jax.ShapeDtypeStruct((B, n_class_p), jnp.float32),
        grid=(nb,),
        in_specs=[
            pl.BlockSpec((TB, n_step), lambda i: (i, 0)),             # token ids (int32)
            pl.BlockSpec((K, ncols), lambda i: (0, 0)),               # C @ [Wt|Ht] stack (bf16)
            pl.BlockSpec((1, n_hidden_p), lambda i: (0, 0)),          # d (f32)
            pl.BlockSpec((n_hidden_p, n_class_p), lambda i: (0, 0)),  # Ut (bf16)
            pl.BlockSpec((1, n_class_p), lambda i: (0, 0)),           # b (f32)
        ],
        out_specs=pl.BlockSpec((TB, n_class_p), lambda i: (i, 0)),
        compiler_params=pltpu.CompilerParams(
            dimension_semantics=("parallel",)),
        cost_estimate=pl.CostEstimate(flops=flops,
                                      transcendentals=B * n_hidden_p,
                                      bytes_accessed=bytes_accessed),
    )(x_idx.astype(jnp.int32), M, d_p, u_bf, b_p)

    if n_class_p != n_class:
        out = out[:, :n_class]
    return out


def nnlm_reference(x_idx, C, Ht, d, Ut, Wt, b, *, n_step, m):
    # Pure-f32 reference matching the PyTorch module's forward.
    B = x_idx.shape[0]
    x = jnp.take(C, x_idx, axis=0).reshape(B, n_step * m)
    tanh = jnp.tanh(d + x @ Ht)
    return b + x @ Wt + tanh @ Ut


if __name__ == "__main__":
    # Small shapes consistent with the module.
    n_class, n_step, m, n_hidden = 128, 4, 32, 32
    batch = 8

    key = jax.random.PRNGKey(0)
    k_c, k_h, k_u, k_w, k_x = jax.random.split(key, 5)

    # Parameter shapes match the module:
    #   C: [n_class, m], H: Linear(n_step*m -> n_hidden, no bias), d: ones(n_hidden),
    #   U: Linear(n_hidden -> n_class, no bias), W: Linear(n_step*m -> n_class, no bias),
    #   b: ones(n_class). Ht/Ut/Wt are the .weight.T layouts.
    C = jax.random.normal(k_c, (n_class, m), jnp.float32) * 0.1
    Ht = jax.random.normal(k_h, (n_step * m, n_hidden), jnp.float32) * 0.1
    Ut = jax.random.normal(k_u, (n_hidden, n_class), jnp.float32) * 0.1
    Wt = jax.random.normal(k_w, (n_step * m, n_class), jnp.float32) * 0.1
    d = jnp.ones((n_hidden,), jnp.float32)
    b = jnp.ones((n_class,), jnp.float32)

    x_idx = jax.random.randint(k_x, (batch, n_step), 0, n_class, dtype=jnp.int32)

    out = nnlm_forward(x_idx, C, Ht, d, Ut, Wt, b)
    out = jax.block_until_ready(out)

    ref = nnlm_reference(x_idx, C, Ht, d, Ut, Wt, b, n_step=n_step, m=m)
    assert out.shape == (batch, n_class)
    # bf16 matmul operands with f32 accumulation -> compare to f32 reference
    # with a bf16-appropriate tolerance.
    assert jnp.allclose(out, ref, atol=2e-2, rtol=2e-2), float(jnp.max(jnp.abs(out - ref)))

    print("KERNEL_OK")
</pallas_src>

<mosaic_0001>
module attributes {stable_mosaic.version = 11 : i64} {
  func.func @nnlm_kernel(%arg0: i32, %arg1: memref<8x4xi32, #tpu.memory_space<vmem>>, %arg2: memref<512x256xbf16, #tpu.memory_space<vmem>>, %arg3: memref<1x128xf32, #tpu.memory_space<vmem>>, %arg4: memref<128x128xbf16, #tpu.memory_space<vmem>>, %arg5: memref<1x128xf32, #tpu.memory_space<vmem>>, %arg6: memref<8x128xf32, #tpu.memory_space<vmem>>) attributes {dimension_semantics = [#tpu.dimension_semantics<parallel>], iteration_bounds = array<i64: 1>, scalar_prefetch = 0 : i64, scratch_operands = 0 : i64, tpu.core_type = #tpu.core_type<tc>, window_params = [{transform_indices = @transform_0, window_bounds = array<i64: 8, 4>}, {pipeline_mode = #tpu.pipeline_mode<synchronous>, transform_indices = @transform_1, window_bounds = array<i64: 512, 256>}, {pipeline_mode = #tpu.pipeline_mode<synchronous>, transform_indices = @transform_2, window_bounds = array<i64: 1, 128>}, {pipeline_mode = #tpu.pipeline_mode<synchronous>, transform_indices = @transform_3, window_bounds = array<i64: 128, 128>}, {pipeline_mode = #tpu.pipeline_mode<synchronous>, transform_indices = @transform_4, window_bounds = array<i64: 1, 128>}, {transform_indices = @transform_5, window_bounds = array<i64: 8, 128>}]} {
    %c0 = arith.constant 0 : index
    %c0_0 = arith.constant 0 : index
    %0 = vector.load %arg1[%c0, %c0_0] : memref<8x4xi32, #tpu.memory_space<vmem>>, vector<8x4xi32>
    %1 = tpu.iota {dimensions = array<i32: 1>} : vector<8x128xi32>
    %2 = vector.extract_strided_slice %0 {offsets = [0, 0], sizes = [8, 1], strides = [1, 1]} : vector<8x4xi32> to vector<8x1xi32>
    %3 = vector.broadcast %2 : vector<8x1xi32> to vector<8x128xi32>
    %4 = arith.cmpi eq, %3, %1 : vector<8x128xi32>
    %5 = arith.extui %4 : vector<8x128xi1> to vector<8x128xi32>
    %6 = arith.sitofp %5 : vector<8x128xi32> to vector<8x128xf32>
    %7 = arith.truncf %6 : vector<8x128xf32> to vector<8x128xbf16>
    %8 = vector.extract_strided_slice %0 {offsets = [0, 1], sizes = [8, 1], strides = [1, 1]} : vector<8x4xi32> to vector<8x1xi32>
    %9 = vector.broadcast %8 : vector<8x1xi32> to vector<8x128xi32>
    %10 = arith.cmpi eq, %9, %1 : vector<8x128xi32>
    %11 = arith.extui %10 : vector<8x128xi1> to vector<8x128xi32>
    %12 = arith.sitofp %11 : vector<8x128xi32> to vector<8x128xf32>
    %13 = arith.truncf %12 : vector<8x128xf32> to vector<8x128xbf16>
    %14 = vector.extract_strided_slice %0 {offsets = [0, 2], sizes = [8, 1], strides = [1, 1]} : vector<8x4xi32> to vector<8x1xi32>
    %15 = vector.broadcast %14 : vector<8x1xi32> to vector<8x128xi32>
    %16 = arith.cmpi eq, %15, %1 : vector<8x128xi32>
    %17 = arith.extui %16 : vector<8x128xi1> to vector<8x128xi32>
    %18 = arith.sitofp %17 : vector<8x128xi32> to vector<8x128xf32>
    %19 = arith.truncf %18 : vector<8x128xf32> to vector<8x128xbf16>
    %20 = vector.extract_strided_slice %0 {offsets = [0, 3], sizes = [8, 1], strides = [1, 1]} : vector<8x4xi32> to vector<8x1xi32>
    %21 = vector.broadcast %20 : vector<8x1xi32> to vector<8x128xi32>
    %22 = arith.cmpi eq, %21, %1 : vector<8x128xi32>
    %23 = arith.extui %22 : vector<8x128xi1> to vector<8x128xi32>
    %24 = arith.sitofp %23 : vector<8x128xi32> to vector<8x128xf32>
    %25 = arith.truncf %24 : vector<8x128xf32> to vector<8x128xbf16>
    %26 = tpu.concatenate %7, %13, %19, %25 in 1 : vector<8x128xbf16>, vector<8x128xbf16>, vector<8x128xbf16>, vector<8x128xbf16> -> vector<8x512xbf16>
    %c0_1 = arith.constant 0 : index
    %c0_2 = arith.constant 0 : index
    %27 = vector.load %arg2[%c0_1, %c0_2] : memref<512x256xbf16, #tpu.memory_space<vmem>>, vector<512x256xbf16>
    %cst = arith.constant dense<0.000000e+00> : vector<8x256xf32>
    %28 = tpu.matmul %26, %27, %cst {dimension_numbers = #tpu.dot_dimension_numbers<[1], [0], [0], [1], [0, 0, 1, 1], [], []>} : vector<8x512xbf16>, vector<512x256xbf16>, vector<8x256xf32> -> vector<8x256xf32>
    %29 = vector.extract_strided_slice %28 {offsets = [0, 0], sizes = [8, 128], strides = [1, 1]} : vector<8x256xf32> to vector<8x128xf32>
    %30 = vector.extract_strided_slice %28 {offsets = [0, 128], sizes = [8, 128], strides = [1, 1]} : vector<8x256xf32> to vector<8x128xf32>
    %c0_3 = arith.constant 0 : index
    %c0_4 = arith.constant 0 : index
    %31 = vector.load %arg3[%c0_3, %c0_4] : memref<1x128xf32, #tpu.memory_space<vmem>>, vector<1x128xf32>
    %32 = vector.broadcast %31 : vector<1x128xf32> to vector<8x128xf32>
    %33 = arith.addf %32, %30 : vector<8x128xf32>
    %34 = math.tanh %33 : vector<8x128xf32>
    %c0_5 = arith.constant 0 : index
    %c0_6 = arith.constant 0 : index
    %35 = vector.load %arg5[%c0_5, %c0_6] : memref<1x128xf32, #tpu.memory_space<vmem>>, vector<1x128xf32>
    %36 = vector.broadcast %35 : vector<1x128xf32> to vector<8x128xf32>
    %37 = arith.addf %36, %29 : vector<8x128xf32>
    %38 = arith.truncf %34 : vector<8x128xf32> to vector<8x128xbf16>
    %c0_7 = arith.constant 0 : index
    %c0_8 = arith.constant 0 : index
    %39 = vector.load %arg4[%c0_7, %c0_8] : memref<128x128xbf16, #tpu.memory_space<vmem>>, vector<128x128xbf16>
    %cst_9 = arith.constant dense<0.000000e+00> : vector<8x128xf32>
    %40 = tpu.matmul %38, %39, %cst_9 {dimension_numbers = #tpu.dot_dimension_numbers<[1], [0], [0], [1], [0, 0, 1, 1], [], []>} : vector<8x128xbf16>, vector<128x128xbf16>, vector<8x128xf32> -> vector<8x128xf32>
    %41 = arith.addf %37, %40 : vector<8x128xf32>
    %c0_10 = arith.constant 0 : index
    %c0_11 = arith.constant 0 : index
    %42 = vector.load %arg6[%c0_10, %c0_11] : memref<8x128xf32, #tpu.memory_space<vmem>>, vector<8x128xf32>
    tpu.vector_store %arg6[%c0_10, %c0_11], %41 {strides = array<i32>} : memref<8x128xf32, #tpu.memory_space<vmem>>, vector<8x128xf32>,
    return
  }
  func.func @transform_0(%arg0: i32) -> (i32, i32) {
    %c0_i32 = arith.constant 0 : i32
    %c0_i32_0 = arith.constant 0 : i32
    return %arg0, %c0_i32 : i32, i32
  }
  func.func @transform_1(%arg0: i32) -> (i32, i32) {
    %c0_i32 = arith.constant 0 : i32
    %c0_i32_0 = arith.constant 0 : i32
    %c0_i32_1 = arith.constant 0 : i32
    return %c0_i32, %c0_i32_0 : i32, i32
  }
  func.func @transform_2(%arg0: i32) -> (i32, i32) {
    %c0_i32 = arith.constant 0 : i32
    %c0_i32_0 = arith.constant 0 : i32
    %c0_i32_1 = arith.constant 0 : i32
    return %c0_i32, %c0_i32_0 : i32, i32
  }
  func.func @transform_3(%arg0: i32) -> (i32, i32) {
    %c0_i32 = arith.constant 0 : i32
    %c0_i32_0 = arith.constant 0 : i32
    %c0_i32_1 = arith.constant 0 : i32
    return %c0_i32, %c0_i32_0 : i32, i32
  }
  func.func @transform_4(%arg0: i32) -> (i32, i32) {
    %c0_i32 = arith.constant 0 : i32
    %c0_i32_0 = arith.constant 0 : i32
    %c0_i32_1 = arith.constant 0 : i32
    return %c0_i32, %c0_i32_0 : i32, i32
  }
  func.func @transform_5(%arg0: i32) -> (i32, i32) {
    %c0_i32 = arith.constant 0 : i32
    %c0_i32_0 = arith.constant 0 : i32
    return %arg0, %c0_i32 : i32, i32
  }
}

</mosaic_0001>

<bundles_post_ra>
// kernel: tpu_custom_call.1
= control target key start
LH: loop header
LB: loop body
LE: loop exit
PB: predicated region body
PF: predicated region fallthrough
CT: control target
= control target key end

     0   :  { %10 = vsyncpa [#allocation3], 0  ;;  %s1219_s0 = inlined_call_operand.vmem [shape: s32[8,4], index: 0, kind: input, shape index: {}]   ;;  %s1220_s1 = inlined_call_operand.hbm [shape: bf16[512,256], index: 1, kind: input, shape index: {}]   ;;  %s1221_s2 = inlined_call_operand.vmem [shape: f32[1,128], index: 2, kind: input, shape index: {}]   ;;  %s1222_s3 = inlined_call_operand.hbm [shape: bf16[128,128], index: 3, kind: input, shape index: {}]   ;;  %s1223_s4 = inlined_call_operand.vmem [shape: f32[1,128], index: 4, kind: input, shape index: {}]   ;;  %s1224_s5 = inlined_call_operand.hbm [shape: f32[8,128], index: 5, kind: output, shape index: {}]  }
   0x1   :  { %11 = vsyncpa [#allocation6], 0 }
   0x2   :  { %12 = vsyncpa [#allocation4], 0  ;;  %s19_s20 = sshll.u32 %s1220_s1, 4  ;;  %s1159_s21 = smov [#allocation2]   ;;  %s20_s20 = int_to_ptr.hbm [resolvable:$true] %s19_s20 }
   0x3   :  { %s21_s22 = sshll.u32 %s1159_s21, 4  ;;  %s34_s25 = sshll.u32 %s1222_s3, 4  ;;  %s22_s22 = int_to_ptr.vmem [resolvable:$true] %s21_s22  ;;  %s35_s25 = int_to_ptr.hbm [resolvable:$true] %s34_s25 }
   0x4   :  { %s1160_s26 = smov 128   ;;  %s1161_s27 = smov 8  }
   0x5   :  { %27 = dma.hbm_to_vmem [thread:$0]  %s20_s20, 8192, %s22_s22, [#allocation3], %s1160_s26, %s1160_s26, %s1161_s27  }
   0x6   :  { %s1162_s28 = smov [#allocation5]   ;;  %s1163_s30 = smov 64  }
   0x7   :  { %s36_s29 = sshll.u32 %s1162_s28, 4  ;;  %s1164_s6 = smov 4   ;;  %s37_s29 = int_to_ptr.vmem [resolvable:$true] %s36_s29 }
   0x8   :  { %42 = dma.hbm_to_vmem [thread:$0]  %s35_s25, 1024, %s37_s29, [#allocation6], %s1163_s30, %s1163_s30, %s1164_s6  }
   0x9   :  { %1153 = dma.done.wait [#allocation3], 8192  }
   0xa   :  { %1154 = vsyncadd [#allocation3], 4294959104 }
   0xb   :  { %1155 = dma.done.wait [#allocation6], 1024  }
   0xc   :  { %1156 = vsyncadd [#allocation6], 4294966272  ;;  %v1165_v0 = vmov 2   ;;  %v1166_v1 = vmov 0   ;;  %v53_v2 = vld [vmem:[%s1219_s0] sm:$0xff]  ;;  %v1167_v34 = vmov 1  }
   0xd   :  { %1073 = vset.pattern.permute.xlu0 %v1165_v0  ;;  %1075 = vset.pattern.permute.xlu1 %v1166_v1  ;;  %v743_v3 = vld [vmem:[#allocation2 + $0x70] sm:$0xf]  ;;  %v1004_v4 = vld [vmem:[#allocation2 + $0x74] sm:$0xf0]  ;;  %v735_v8 = vld [vmem:[#allocation2 + $0x60] sm:$0xf] }
   0xe   :  { %57 = vperm.xlu1 %1075, %v53_v2   ;;  %71 = vperm.xlu0 %1073, %v53_v2   ;;  %v744_v5 = vor.u32 %v1004_v4, %v743_v3  ;;  %v871_v6 = vld [vmem:[#allocation2 + $0x170] sm:$0xf]  ;;  %v1036_v7 = vld [vmem:[#allocation2 + $0x174] sm:$0xf0]  ;;  %v1002_v10 = vld [vmem:[#allocation2 + $0x64] sm:$0xf0] }
   0xf   :  { %v872_v9 = vor.u32 %v1036_v7, %v871_v6  ;;  %v863_v11 = vld [vmem:[#allocation2 + $0x160] sm:$0xf]  ;;  %v1034_v12 = vld [vmem:[#allocation2 + $0x164] sm:$0xf0]  ;;  %v736_v13 = vor.u32 %v1002_v10, %v735_v8  ;;  %v727_v14 = vld [vmem:[#allocation2 + $0x50] sm:$0xf] }
  0x10   :  { %468 = vmatpush.bf16.msra.mxu0 %v744_v5  ;;  %v1000_v15 = vld [vmem:[#allocation2 + $0x54] sm:$0xf0]  ;;  %v864_v16 = vor.u32 %v1034_v12, %v863_v11  ;;  %v855_v17 = vld [vmem:[#allocation2 + $0x150] sm:$0xf]  ;;  %v799_v26 = vld [vmem:[#allocation2 + $0xe0] sm:$0xf] }
  0x11   :  { %494 = vmatpush.bf16.msra.mxu2 %v872_v9  ;;  %v807_v18 = vld [vmem:[#allocation2 + $0xf0] sm:$0xf]  ;;  %v1020_v19 = vld [vmem:[#allocation2 + $0xf4] sm:$0xf0]  ;;  %v728_v25 = vor.u32 %v1000_v15, %v727_v14  ;;  %v1018_v27 = vld [vmem:[#allocation2 + $0xe4] sm:$0xf0] }
  0x12   :  { %v1032_v20 = vld [vmem:[#allocation2 + $0x154] sm:$0xf0]  ;;  %v808_v21 = vor.u32 %v1020_v19, %v807_v18  ;;  %v935_v22 = vld [vmem:[#allocation2 + $0x1f0] sm:$0xf]  ;;  %v927_v28 = vld [vmem:[#allocation2 + $0x1e0] sm:$0xf]  ;;  %v800_v32 = vor.u32 %v1018_v27, %v799_v26 }
  0x13   :  { %v1052_v23 = vld [vmem:[#allocation2 + $0x1f4] sm:$0xf0]  ;;  %v856_v29 = vor.u32 %v1032_v20, %v855_v17  ;;  %v719_v30 = vld [vmem:[#allocation2 + $0x40] sm:$0xf]  ;;  %v998_v31 = vld [vmem:[#allocation2 + $0x44] sm:$0xf0] }
  0x14   :  { %v936_v24 = vor.u32 %v1052_v23, %v935_v22  ;;  %469 = vmatpush.bf16.msra.mxu0 %v736_v13  ;;  %481 = vmatpush.bf16.msra.mxu1 %v808_v21  ;;  %v1050_v33 = vld [vmem:[#allocation2 + $0x1e4] sm:$0xf0]  ;;  %v1168_v35 = vmov 3   ;;  %v847_v36 = vld [vmem:[#allocation2 + $0x140] sm:$0xf]  ;;  %v720_v43 = vor.u32 %v998_v31, %v719_v30  ;;  %s1170_s10 = smov [#allocation7]  }
  0x15   :  { %495 = vmatpush.bf16.msra.mxu2 %v864_v16  ;;  %v1030_v37 = vld [vmem:[#allocation2 + $0x144] sm:$0xf0]  ;;  %v928_v38 = vor.u32 %v1050_v33, %v927_v28  ;;  %v791_v39 = vld [vmem:[#allocation2 + $0xd0] sm:$0xf]  ;;  %v1016_v40 = vld [vmem:[#allocation2 + $0xd4] sm:$0xf0] }
  0x16   :  { %507 = vmatpush.bf16.msra.mxu3 %v936_v24  ;;  %1076 = vset.pattern.permute.xlu1 %v1167_v34  ;;  %v919_v41 = vld [vmem:[#allocation2 + $0x1d0] sm:$0xf]  ;;  %v1048_v42 = vld [vmem:[#allocation2 + $0x1d4] sm:$0xf0]  ;;  %v792_v46 = vor.u32 %v1016_v40, %v791_v39  ;;  %v848_v47 = vor.u32 %v1030_v37, %v847_v36  ;;  %v783_v50 = vld [vmem:[#allocation2 + $0xc0] sm:$0xf] }
  0x17   :  { %1074 = vset.pattern.permute.xlu0 %v1168_v35  ;;  %64 = vperm.xlu1 %1076, %v53_v2   ;;  %v711_v44 = vld [vmem:[#allocation2 + $0x30] sm:$0xf]  ;;  %v996_v45 = vld [vmem:[#allocation2 + $0x34] sm:$0xf0]  ;;  %v920_v49 = vor.u32 %v1048_v42, %v919_v41  ;;  %v1014_v51 = vld [vmem:[#allocation2 + $0xc4] sm:$0xf0] }
  0x18   :  { %78 = vperm.xlu0 %1074, %v53_v2   ;;  %470 = vmatpush.bf16.msra.mxu0 %v728_v25  ;;  %v839_v48 = vld [vmem:[#allocation2 + $0x130] sm:$0xf]  ;;  %v1028_v52 = vld [vmem:[#allocation2 + $0x134] sm:$0xf0]  ;;  %v911_v53 = vld [vmem:[#allocation2 + $0x1c0] sm:$0xf]  ;;  %v712_v55 = vor.u32 %v996_v45, %v711_v44  ;;  %v784_v58 = vor.u32 %v1014_v51, %v783_v50 }
  0x19   :  { %482 = vmatpush.bf16.msra.mxu1 %v800_v32  ;;  %496 = vmatpush.bf16.msra.mxu2 %v856_v29  ;;  %v1046_v54 = vld [vmem:[#allocation2 + $0x1c4] sm:$0xf0]  ;;  %v703_v56 = vld [vmem:[#allocation2 + $0x20] sm:$0xf]  ;;  %v840_v59 = vor.u32 %v1028_v52, %v839_v48  ;;  %v775_v62 = vld [vmem:[#allocation2 + $0xb0] sm:$0xf] }
  0x1a   :  { %508 = vmatpush.bf16.msra.mxu3 %v928_v38  ;;  %v994_v57 = vld [vmem:[#allocation2 + $0x24] sm:$0xf0]  ;;  %v831_v60 = vld [vmem:[#allocation2 + $0x120] sm:$0xf]  ;;  %v912_v61 = vor.u32 %v1046_v54, %v911_v53  ;;  %v1012_v63 = vld [vmem:[#allocation2 + $0xb4] sm:$0xf0] }
  0x1b   :  { %v1026_v0 = vld [vmem:[#allocation2 + $0x124] sm:$0xf0]  ;;  %v903_v1 = vld [vmem:[#allocation2 + $0x1b0] sm:$0xf]  ;;  %v1044_v2 = vld [vmem:[#allocation2 + $0x1b4] sm:$0xf0]  ;;  %v704_v3 = vor.u32 %v994_v57, %v703_v56  ;;  %v776_v6 = vor.u32 %v1012_v63, %v775_v62 }
  0x1c   :  { %471 = vmatpush.bf16.msra.mxu0 %v720_v43  ;;  %v695_v4 = vld [vmem:[#allocation2 + $0x10] sm:$0xf]  ;;  %v992_v5 = vld [vmem:[#allocation2 + $0x14] sm:$0xf0]  ;;  %v832_v7 = vor.u32 %v1026_v0, %v831_v60  ;;  %v904_v9 = vor.u32 %v1044_v2, %v903_v1  ;;  %v767_v10 = vld [vmem:[#allocation2 + $0xa0] sm:$0xf] }
  0x1d   :  { %483 = vmatpush.bf16.msra.mxu1 %v792_v46  ;;  %497 = vmatpush.bf16.msra.mxu2 %v848_v47  ;;  %v823_v8 = vld [vmem:[#allocation2 + $0x110] sm:$0xf]  ;;  %v1010_v11 = vld [vmem:[#allocation2 + $0xa4] sm:$0xf0]  ;;  %v1024_v12 = vld [vmem:[#allocation2 + $0x114] sm:$0xf0]  ;;  %v696_v15 = vor.u32 %v992_v5, %v695_v4 }
  0x1e   :  { %509 = vmatpush.bf16.msra.mxu3 %v920_v49  ;;  %v895_v13 = vld [vmem:[#allocation2 + $0x1a0] sm:$0xf]  ;;  %v1042_v14 = vld [vmem:[#allocation2 + $0x1a4] sm:$0xf0]  ;;  %v768_v19 = vor.u32 %v1010_v11, %v767_v10  ;;  %v824_v20 = vor.u32 %v1024_v12, %v823_v8  ;;  %v759_v23 = vld [vmem:[#allocation2 + $0x90] sm:$0xf] }
  0x1f   :  { %v687_v16 = vld [vmem:[#allocation2] sm:$0xf]  ;;  %v990_v17 = vld [vmem:[#allocation2 + $0x4] sm:$0xf0]  ;;  %v896_v22 = vor.u32 %v1042_v14, %v895_v13  ;;  %v1008_v24 = vld [vmem:[#allocation2 + $0x94] sm:$0xf0] }
  0x20   :  { %472 = vmatpush.bf16.msra.mxu0 %v712_v55  ;;  %v815_v18 = vld [vmem:[#allocation2 + $0x100] sm:$0xf]  ;;  %v1022_v21 = vld [vmem:[#allocation2 + $0x104] sm:$0xf0]  ;;  %v1003_v25 = vld [vmem:[#allocation2 + $0x74] sm:$0xf]  ;;  %v688_v31 = vor.u32 %v990_v17, %v687_v16  ;;  %v760_v32 = vor.u32 %v1008_v24, %v759_v23 }
  0x21   :  { %484 = vmatpush.bf16.msra.mxu1 %v784_v58  ;;  %498 = vmatpush.bf16.msra.mxu2 %v840_v59  ;;  %v745_v26 = vld [vmem:[#allocation2 + $0x78] sm:$0xf0]  ;;  %v1035_v27 = vld [vmem:[#allocation2 + $0x174] sm:$0xf]  ;;  %v887_v29 = vld [vmem:[#allocation2 + $0x190] sm:$0xf]  ;;  %v816_v35 = vor.u32 %v1022_v21, %v815_v18 }
  0x22   :  { %510 = vmatpush.bf16.msra.mxu3 %v912_v61  ;;  %v873_v28 = vld [vmem:[#allocation2 + $0x178] sm:$0xf0]  ;;  %v1040_v30 = vld [vmem:[#allocation2 + $0x194] sm:$0xf0]  ;;  %v1001_v33 = vld [vmem:[#allocation2 + $0x64] sm:$0xf]  ;;  %v748_v36 = vor.u32 %v1003_v25, %v745_v26 }
  0x23   :  { %v737_v34 = vld [vmem:[#allocation2 + $0x68] sm:$0xf0]  ;;  %v1033_v37 = vld [vmem:[#allocation2 + $0x164] sm:$0xf]  ;;  %v751_v38 = vld [vmem:[#allocation2 + $0x80] sm:$0xf]  ;;  %v876_v40 = vor.u32 %v1035_v27, %v873_v28  ;;  %v888_v41 = vor.u32 %v1040_v30, %v887_v29 }
  0x24   :  { %473 = vmatpush.bf16.msra.mxu0 %v704_v3  ;;  %v1006_v39 = vld [vmem:[#allocation2 + $0x84] sm:$0xf0]  ;;  %v1019_v42 = vld [vmem:[#allocation2 + $0xf4] sm:$0xf]  ;;  %v809_v43 = vld [vmem:[#allocation2 + $0xf8] sm:$0xf0]  ;;  %v740_v50 = vor.u32 %v1001_v33, %v737_v34 }
  0x25   :  { %485 = vmatpush.bf16.msra.mxu1 %v776_v6  ;;  %499 = vmatpush.bf16.msra.mxu2 %v832_v7  ;;  %v865_v44 = vld [vmem:[#allocation2 + $0x168] sm:$0xf0]  ;;  %v879_v45 = vld [vmem:[#allocation2 + $0x180] sm:$0xf]  ;;  %v1038_v46 = vld [vmem:[#allocation2 + $0x184] sm:$0xf0]  ;;  %v752_v47 = vor.u32 %v1006_v39, %v751_v38  ;;  %v812_v51 = vor.u32 %v1019_v42, %v809_v43 }
  0x26   :  { %511 = vmatpush.bf16.msra.mxu3 %v904_v9  ;;  %v1051_v48 = vld [vmem:[#allocation2 + $0x1f4] sm:$0xf]  ;;  %v937_v49 = vld [vmem:[#allocation2 + $0x1f8] sm:$0xf0]  ;;  %v868_v52 = vor.u32 %v1033_v37, %v865_v44  ;;  %v880_v53 = vor.u32 %v1038_v46, %v879_v45  ;;  %v997_v61 = vld [vmem:[#allocation2 + $0x44] sm:$0xf] }
  0x27   :  { %v999_v54 = vld [vmem:[#allocation2 + $0x54] sm:$0xf]  ;;  %v729_v55 = vld [vmem:[#allocation2 + $0x58] sm:$0xf0]  ;;  %v940_v58 = vor.u32 %v1051_v48, %v937_v49  ;;  %v721_v62 = vld [vmem:[#allocation2 + $0x48] sm:$0xf0] }
  0x28   :  { %474 = vmatpush.bf16.msra.mxu0 %v696_v15  ;;  %v1031_v56 = vld [vmem:[#allocation2 + $0x154] sm:$0xf]  ;;  %v857_v57 = vld [vmem:[#allocation2 + $0x158] sm:$0xf0]  ;;  %v732_v59 = vor.u32 %v999_v54, %v729_v55  ;;  %v1029_v63 = vld [vmem:[#allocation2 + $0x144] sm:$0xf]  ;;  %v724_v1 = vor.u32 %v997_v61, %v721_v62 }
  0x29   :  { %486 = vmatpush.bf16.msra.mxu1 %v768_v19  ;;  %500 = vmatpush.bf16.msra.mxu2 %v824_v20  ;;  %v860_v60 = vor.u32 %v1031_v56, %v857_v57  ;;  %v849_v0 = vld [vmem:[#allocation2 + $0x148] sm:$0xf0]  ;;  %v1017_v3 = vld [vmem:[#allocation2 + $0xe4] sm:$0xf]  ;;  %v995_v9 = vld [vmem:[#allocation2 + $0x34] sm:$0xf] }
  0x2a   :  { %512 = vmatpush.bf16.msra.mxu3 %v896_v22  ;;  %v852_v2 = vor.u32 %v1029_v63, %v849_v0  ;;  %v801_v4 = vld [vmem:[#allocation2 + $0xe8] sm:$0xf0]  ;;  %v1049_v5 = vld [vmem:[#allocation2 + $0x1e4] sm:$0xf]  ;;  %v713_v10 = vld [vmem:[#allocation2 + $0x38] sm:$0xf0] }
  0x2b   :  { %v804_v6 = vor.u32 %v1017_v3, %v801_v4  ;;  %v929_v7 = vld [vmem:[#allocation2 + $0x1e8] sm:$0xf0]  ;;  %v1027_v11 = vld [vmem:[#allocation2 + $0x134] sm:$0xf]  ;;  %v716_v12 = vor.u32 %v995_v9, %v713_v10  ;;  %v841_v13 = vld [vmem:[#allocation2 + $0x138] sm:$0xf0] }
  0x2c   :  { %475 = vmatpush.bf16.msra.mxu0 %v688_v31  ;;  %v932_v8 = vor.u32 %v1049_v5, %v929_v7  ;;  %v1015_v14 = vld [vmem:[#allocation2 + $0xd4] sm:$0xf]  ;;  %v844_v15 = vor.u32 %v1027_v11, %v841_v13  ;;  %v793_v16 = vld [vmem:[#allocation2 + $0xd8] sm:$0xf0]  ;;  %v993_v21 = vld [vmem:[#allocation2 + $0x24] sm:$0xf]  ;;  %v54_v5 = vlaneseq }
  0x2d   :  { %487 = vmatpush.bf16.msra.mxu1 %v760_v32  ;;  %501 = vmatpush.bf16.msra.mxu2 %v816_v35  ;;  %v1047_v17 = vld [vmem:[#allocation2 + $0x1d4] sm:$0xf]  ;;  %v921_v18 = vld [vmem:[#allocation2 + $0x1d8] sm:$0xf0]  ;;  %v796_v19 = vor.u32 %v1015_v14, %v793_v16  ;;  %v705_v22 = vld [vmem:[#allocation2 + $0x28] sm:$0xf0] }
  0x2e   :  { %513 = vmatpush.bf16.msra.mxu3 %v888_v41  ;;  %v924_v20 = vor.u32 %v1047_v17, %v921_v18  ;;  %v1025_v23 = vld [vmem:[#allocation2 + $0x124] sm:$0xf]  ;;  %v708_v24 = vor.u32 %v993_v21, %v705_v22  ;;  %v833_v25 = vld [vmem:[#allocation2 + $0x128] sm:$0xf0]  ;;  %v991_v33 = vld [vmem:[#allocation2 + $0x14] sm:$0xf] }
  0x2f   :  { %v1013_v26 = vld [vmem:[#allocation2 + $0xc4] sm:$0xf]  ;;  %v785_v27 = vld [vmem:[#allocation2 + $0xc8] sm:$0xf0]  ;;  %v836_v28 = vor.u32 %v1025_v23, %v833_v25  ;;  %v697_v34 = vld [vmem:[#allocation2 + $0x18] sm:$0xf0] }
  0x30   :  { %520 = vmatpush.bf16.msrb.mxu0 %v748_v36  ;;  %v788_v29 = vor.u32 %v1013_v26, %v785_v27  ;;  %v1045_v30 = vld [vmem:[#allocation2 + $0x1c4] sm:$0xf]  ;;  %v913_v31 = vld [vmem:[#allocation2 + $0x1c8] sm:$0xf0]  ;;  %v1023_v35 = vld [vmem:[#allocation2 + $0x114] sm:$0xf]  ;;  %v700_v36 = vor.u32 %v991_v33, %v697_v34 }
  0x31   :  { %546 = vmatpush.bf16.msrb.mxu2 %v876_v40  ;;  %488 = vmatpush.bf16.msra.mxu1 %v752_v47  ;;  %v916_v32 = vor.u32 %v1045_v30, %v913_v31  ;;  %v825_v37 = vld [vmem:[#allocation2 + $0x118] sm:$0xf0]  ;;  %v1011_v38 = vld [vmem:[#allocation2 + $0xb4] sm:$0xf]  ;;  %v989_v45 = vld [vmem:[#allocation2 + $0x4] sm:$0xf] }
  0x32   :  { %514 = vmatpush.bf16.msra.mxu3 %v880_v53  ;;  %v777_v39 = vld [vmem:[#allocation2 + $0xb8] sm:$0xf0]  ;;  %v828_v40 = vor.u32 %v1023_v35, %v825_v37  ;;  %v1043_v42 = vld [vmem:[#allocation2 + $0x1b4] sm:$0xf]  ;;  %v689_v46 = vld [vmem:[#allocation2 + $0x8] sm:$0xf0] }
  0x33   :  { %v780_v41 = vor.u32 %v1011_v38, %v777_v39  ;;  %v905_v43 = vld [vmem:[#allocation2 + $0x1b8] sm:$0xf0]  ;;  %v1021_v47 = vld [vmem:[#allocation2 + $0x104] sm:$0xf]  ;;  %v692_v48 = vor.u32 %v989_v45, %v689_v46  ;;  %v817_v49 = vld [vmem:[#allocation2 + $0x108] sm:$0xf0] }
  0x34   :  { %521 = vmatpush.bf16.msrb.mxu0 %v740_v50  ;;  %v908_v44 = vor.u32 %v1043_v42, %v905_v43  ;;  %v1009_v50 = vld [vmem:[#allocation2 + $0xa4] sm:$0xf]  ;;  %v897_v55 = vld [vmem:[#allocation2 + $0x1a8] sm:$0xf0]  ;;  %v1007_v57 = vld [vmem:[#allocation2 + $0x94] sm:$0xf] }
  0x35   :  { %533 = vmatpush.bf16.msrb.mxu1 %v812_v51  ;;  %547 = vmatpush.bf16.msrb.mxu2 %v868_v52  ;;  %v769_v51 = vld [vmem:[#allocation2 + $0xa8] sm:$0xf0]  ;;  %v820_v52 = vor.u32 %v1021_v47, %v817_v49  ;;  %v1041_v54 = vld [vmem:[#allocation2 + $0x1a4] sm:$0xf]  ;;  %v889_v61 = vld [vmem:[#allocation2 + $0x198] sm:$0xf0] }
  0x36   :  { %559 = vmatpush.bf16.msrb.mxu3 %v940_v58  ;;  %v772_v53 = vor.u32 %v1009_v50, %v769_v51  ;;  %v900_v56 = vor.u32 %v1041_v54, %v897_v55  ;;  %v761_v58 = vld [vmem:[#allocation2 + $0x98] sm:$0xf0]  ;;  %v1005_v62 = vld [vmem:[#allocation2 + $0x84] sm:$0xf]  ;;  %v753_v63 = vld [vmem:[#allocation2 + $0x88] sm:$0xf0] }
  0x37   :  { %v756_v3 = vor.u32 %v1005_v62, %v753_v63  ;;  %v1169_v9 = vmov 1.0|1.0   ;;  %v1059_v13 = vld [vmem:[#allocation5 + $0x30] sm:$0xff]  ;;  %v1058_v14 = vld [vmem:[#allocation5 + $0x28] sm:$0xff]  ;;  %v1056_v16 = vld [vmem:[#allocation5 + $0x18] sm:$0xff]  ;;  %s668_s11 = sshll.u32 %s1170_s10, 4  ;;  %s669_s11 = int_to_ptr.vmem [resolvable:$true] %s668_s11 }
  0x38   :  { %522 = vmatpush.bf16.msrb.mxu0 %v732_v59  ;;  %v1039_v59 = vld [vmem:[#allocation2 + $0x194] sm:$0xf]  ;;  %v1053_v23 = vld [vmem:[#allocation5] sm:$0xff]  ;;  %s670_s14 = sshll.u32 %s1224_s5, 4  ;;  %s671_s14 = int_to_ptr.hbm [resolvable:$true] %s670_s14 }
  0x39   :  { %548 = vmatpush.bf16.msrb.mxu2 %v860_v60  ;;  %534 = vmatpush.bf16.msrb.mxu1 %v804_v6  ;;  %v764_v60 = vor.u32 %v1007_v57, %v761_v58  ;;  %v892_v0 = vor.u32 %v1039_v59, %v889_v61  ;;  %v55_v6 = vand.u32 127, %v54_v5  ;;  %v1055_v18 = vld [vmem:[#allocation5 + $0x10] sm:$0xff]  ;;  %v1077_v38 = vld [vmem:[%s1221_s2] ss:$0 sm:$0xff] }
  0x3a   :  { %560 = vmatpush.bf16.msrb.mxu3 %v932_v8  ;;  %v1078_v46 = vld [vmem:[%s1223_s4] ss:$0 sm:$0xff] }
  0x3c   :  { %523 = vmatpush.bf16.msrb.mxu0 %v724_v1  ;;  %v1037_v1 = vld [vmem:[#allocation2 + $0x184] sm:$0xf] }
  0x3d   :  { %549 = vmatpush.bf16.msrb.mxu2 %v852_v2  ;;  %535 = vmatpush.bf16.msrb.mxu1 %v796_v19  ;;  %v881_v2 = vld [vmem:[#allocation2 + $0x188] sm:$0xf0] }
  0x3e   :  { %561 = vmatpush.bf16.msrb.mxu3 %v924_v20  ;;  %v884_v4 = vor.u32 %v1037_v1, %v881_v2  ;;  %v1054_v19 = vld [vmem:[#allocation5 + $0x8] sm:$0xff] }
  0x40   :  { %524 = vmatpush.bf16.msrb.mxu0 %v716_v12  ;;  %v1060_v12 = vld [vmem:[#allocation5 + $0x38] sm:$0xff] }
  0x41   :  { %550 = vmatpush.bf16.msrb.mxu2 %v844_v15  ;;  %536 = vmatpush.bf16.msrb.mxu1 %v788_v29  ;;  %v1057_v15 = vld [vmem:[#allocation5 + $0x20] sm:$0xff] }
  0x42   :  { %562 = vmatpush.bf16.msrb.mxu3 %v916_v32 }
  0x44   :  { %525 = vmatpush.bf16.msrb.mxu0 %v708_v24 }
  0x45   :  { %551 = vmatpush.bf16.msrb.mxu2 %v836_v28  ;;  %537 = vmatpush.bf16.msrb.mxu1 %v780_v41 }
  0x46   :  { %563 = vmatpush.bf16.msrb.mxu3 %v908_v44 }
  0x48   :  { %526 = vmatpush.bf16.msrb.mxu0 %v700_v36 }
  0x49   :  { %552 = vmatpush.bf16.msrb.mxu2 %v828_v40  ;;  %538 = vmatpush.bf16.msrb.mxu1 %v772_v53 }
  0x4a   :  { %564 = vmatpush.bf16.msrb.mxu3 %v900_v56 }
  0x4c   :  { %527 = vmatpush.bf16.msrb.mxu0 %v692_v48 }
  0x4d   :  { %553 = vmatpush.bf16.msrb.mxu2 %v820_v52  ;;  %539 = vmatpush.bf16.msrb.mxu1 %v764_v60 }
  0x4e   :  { %565 = vmatpush.bf16.msrb.mxu3 %v892_v0 }
  0x51   :  { %540 = vmatpush.bf16.msrb.mxu1 %v756_v3 }
  0x52   :  { %566 = vmatpush.bf16.msrb.mxu3 %v884_v4 }
  0x80   :  { %v58_v7 = vpop.permute.xlu1 %57  ;;  %v72_v8 = vpop.permute.xlu0 %71 }
  0x81   :  { %vm59_vm0 = vcmp.eq.s32.totalorder %v58_v7, %v55_v6  ;;  %vm73_vm1 = vcmp.eq.s32.totalorder %v72_v8, %v55_v6 }
  0x82   :  { %vm941_vm2 = vmpackc.low %vm59_vm0, %vm59_vm0 }
  0x83   :  { %vm945_vm3 = vmpackc.low %vm73_vm1, %vm73_vm1  ;;  %942 = vmatmul.msk.bf16.vlgmr.msra.gmra.mxu0 %vm941_vm2, %v1169_v9 }
  0x84   :  { %946 = vmatmul.msk.bf16.vlgmr.msra.gmra.mxu2 %vm945_vm3, %v1169_v9  ;;  %648 = vmatpush.bf16.msra.mxu0 %v1060_v12 }
  0x88   :  { %649 = vmatpush.bf16.msra.mxu0 %v1059_v13 }
  0x89   :  { %v65_v10 = vpop.permute.xlu1 %64 }
  0x8a   :  { %v79_v11 = vpop.permute.xlu0 %78  ;;  %vm66_vm4 = vcmp.eq.s32.totalorder %v65_v10, %v55_v6 }
  0x8b   :  { %vm80_vm5 = vcmp.eq.s32.totalorder %v79_v11, %v55_v6  ;;  %vm943_vm6 = vmpackc.low %vm66_vm4, %vm66_vm4 }
  0x8c   :  { %vm947_vm7 = vmpackc.low %vm80_vm5, %vm80_vm5  ;;  %944 = vmatmul.msk.bf16.vlgmr.msra.gmra.mxu1 %vm943_vm6, %v1169_v9  ;;  %650 = vmatpush.bf16.msra.mxu0 %v1058_v14 }
  0x8d   :  { %948 = vmatmul.msk.bf16.vlgmr.msra.gmra.mxu3 %vm947_vm7, %v1169_v9 }
  0x90   :  { %651 = vmatpush.bf16.msra.mxu0 %v1057_v15 }
  0x93   :  { %950 = vmatmul.msk.bf16.vlgmr.msrb.gmra.mxu0 %vm941_vm2, %v1169_v9 }
  0x94   :  { %954 = vmatmul.msk.bf16.vlgmr.msrb.gmra.mxu2 %vm945_vm3, %v1169_v9  ;;  %652 = vmatpush.bf16.msra.mxu0 %v1056_v16 }
  0x98   :  { %653 = vmatpush.bf16.msra.mxu0 %v1055_v18 }
  0x9c   :  { %952 = vmatmul.msk.bf16.vlgmr.msrb.gmra.mxu1 %vm943_vm6, %v1169_v9  ;;  %654 = vmatpush.bf16.msra.mxu0 %v1054_v19 }
  0x9d   :  { %956 = vmatmul.msk.bf16.vlgmr.msrb.gmra.mxu3 %vm947_vm7, %v1169_v9 }
  0xa0   :  { %655 = vmatpush.bf16.msra.mxu0 %v1053_v23 }
 0x100   :  { %v477_v17 = vpop.f32.mrf.mxu0 }
 0x107   :  { %v503_v20 = vpop.f32.mrf.mxu2 }
 0x108   :  { %v479_v21 = vpop.f32.mrf.mxu0 }
 0x109   :  { %v490_v22 = vpop.f32.mrf.mxu1 }
 0x10a   :  { %v491_v24 = vadd.f32 %v490_v22, %v477_v17 }
 0x10c   :  { %v504_v25 = vadd.f32 %v503_v20, %v491_v24 }
 0x10f   :  { %v505_v26 = vpop.f32.mrf.mxu2 }
 0x110   :  { %v516_v27 = vpop.f32.mrf.mxu3  ;;  %v529_v28 = vpop.f32.mrf.mxu0 }
 0x111   :  { %v517_v29 = vadd.f32 %v516_v27, %v504_v25  ;;  %v492_v30 = vpop.f32.mrf.mxu1 }
 0x113   :  { %v582_v47 = vadd.f32 %v1078_v46, %v517_v29 }
 0x117   :  { %v555_v31 = vpop.f32.mrf.mxu2 }
 0x118   :  { %v518_v32 = vpop.f32.mrf.mxu3  ;;  %v531_v33 = vpop.f32.mrf.mxu0 }
 0x119   :  { %v542_v34 = vpop.f32.mrf.mxu1 }
 0x11a   :  { %v543_v35 = vadd.f32 %v542_v34, %v529_v28 }
 0x11c   :  { %v556_v37 = vadd.f32 %v555_v31, %v543_v35 }
 0x11f   :  { %v557_v36 = vpop.f32.mrf.mxu2 }
 0x120   :  { %v568_v39 = vpop.f32.mrf.mxu3 }
 0x121   :  { %v569_v40 = vadd.f32 %v568_v39, %v556_v37  ;;  %v544_v41 = vpop.f32.mrf.mxu1 }
 0x123   :  { %v576_v42 = vadd.f32 %v1077_v38, %v569_v40 }
 0x125   :  { %1079 = vtanh.f32 %v576_v42 }
 0x128   :  { %v570_v43 = vpop.f32.mrf.mxu3 }
 0x12b   :  { %v1080_v44 = vpop.eup %1079 }
 0x12c   :  { %v583_v45 = vpack.c.bf16 %v1080_v44, %v1080_v44 }
 0x12e   :  { %656 = vmatmul.bf16.vlgmr.msra.gmra.mxu0 %v583_v45 }
 0x1ab   :  { %v657_v48 = vpop.f32.mrf.mxu0 }
 0x1ac   :  { %v661_v49 = vadd.f32 %v657_v48, %v582_v47 }
 0x1ae   :  { %662 = vst [vmem:[#allocation7] sm:$0xff] %v661_v49 }
 0x1af   :  { %673 = dma.vmem_to_hbm [thread:$0]  %s669_s11, 128, %s671_s14, [#allocation4]  }
 0x1b3   :  { %v659_v50 = vpop.f32.mrf.mxu0 }
 0x1b4   :  { %1157 = dma.done.wait [#allocation4], 128  }
 0x1b5   :  { %1158 = vsyncadd [#allocation4], 4294967168 }
 0x1b6   :  { %678 = vsyncpa [#allocation3], 1 }
 0x1b7   :  { %679 = vsyncpa [#allocation6], 1 }
 0x1b8   :  { %680 = vsyncpa [#allocation4], 1 }

</bundles_post_ra>
